<compile_context>
chip_gen: v7x
topology: tpu7x:2x2x1
jax: 0.10.0
libtpu: 0.0.40
codegen_flags: <defaults>
</compile_context>

<pallas_src>
import math
from functools import partial

import jax
import jax.numpy as jnp
from jax.experimental import pallas as pl
from jax.experimental.pallas import tpu as pltpu


# ----------------------------------------------------------------------------- helpers
def _round_up(v, m):
    return ((v + m - 1) // m) * m


def _cdiv(a, b):
    return (a + b - 1) // b


_DIM_SEM = ("parallel", "parallel", "arbitrary")

# Tile caps. With bf16 matmul inputs the double-buffered working set stays well
# under v5e's 16 MiB scoped-VMEM default and far under v7x's 64 MiB physical VMEM;
# vmem_limit_bytes is still set explicitly below from the actual tile sizes.
_TB_CAP = 512
_TK_CAP = 1024
_TN_CAP = 512


def _k_tile(Kp):
    """Largest 128-multiple <= _TK_CAP that divides Kp (Kp is a multiple of 128)."""
    if Kp <= _TK_CAP:
        return Kp
    tk = _TK_CAP
    while Kp % tk:
        tk -= 128
    return tk


def _n_tile(Np):
    if Np <= _TN_CAP:
        return Np
    tn = _TN_CAP
    while Np % tn:
        tn -= 128
    return tn


def _common_tiles(B, Kp, Np):
    tk = _k_tile(Kp)
    tn = _n_tile(Np)
    tb = min(_round_up(B, 8), _TB_CAP)
    # v7x has 2 TensorCores: make sure at least one "parallel" grid axis has >= 2
    # blocks when the problem is big enough to split.
    if _cdiv(B, tb) == 1 and Np // tn == 1:
        if tn % 256 == 0:
            tn //= 2
        elif B >= 16:
            tb = _round_up(_cdiv(B, 2), 8)
    return tb, tk, tn


def _vmem_limit_bytes(tb, tk, tn, *, sample):
    """Conservative VMEM budget for the double-buffered pipeline of one kernel."""
    n_w = 2 if sample else 1
    in_bytes = tb * tk * 2 + n_w * tk * tn * 2 + n_w * tn * 4       # x + W(s) + bias(es)
    if sample:
        in_bytes += tb * tn * 4                                      # noise tile (f32)
    out_bytes = tb * tn * 4                                          # f32 output tile
    scratch = tb * tn * 4 if sample else 0                           # variance accumulator
    total = 2 * in_bytes + 2 * out_bytes + scratch
    return min(max(2 * total + (2 << 20), 16 << 20), 60 << 20)


def prepare_linear_params(weight, bias):
    """Cast+pad constant parameters once (call at init, not per forward).

    weight (K, N) -> bf16 (Kp, Np) zero-padded; bias (1, N) -> f32 (1, Np).
    K padding MUST be zeros (reduction axis); N padding only feeds sliced-off columns.
    """
    K, N = weight.shape
    Kp, Np = _round_up(K, 128), _round_up(N, 128)
    w = jnp.pad(weight.astype(jnp.bfloat16), ((0, Kp - K), (0, Np - N)))
    b = jnp.pad(jnp.reshape(bias, (1, N)).astype(jnp.float32), ((0, 0), (0, Np - N)))
    return w, b


# ----------------------------------------------------------------------------- kernels
def _zmean_kernel(x_ref, wm_ref, bm_ref, o_ref):
    """'map' path: z_mean = x @ W_mean + b_mean (accumulated directly into o_ref)."""
    k = pl.program_id(2)

    @pl.when(k == 0)
    def _():
        o_ref[...] = jnp.zeros_like(o_ref)

    o_ref[...] += jnp.dot(x_ref[...], wm_ref[...],
                          preferred_element_type=jnp.float32)

    @pl.when(k == pl.num_programs(2) - 1)
    def _():
        o_ref[...] += bm_ref[...]


def _sample_kernel(x_ref, wm_ref, wv_ref, bm_ref, bv_ref, noise_ref, o_ref, var_acc):
    """'mc'/'kl' path: z = (x@W_mean + b_mean) + sqrt(x^2@W_var + b_var) * noise."""
    k = pl.program_id(2)

    @pl.when(k == 0)
    def _():
        o_ref[...] = jnp.zeros_like(o_ref)
        var_acc[...] = jnp.zeros_like(var_acc)

    x = x_ref[...]                                   # bf16
    xf = x.astype(jnp.float32)
    xsq = (xf * xf).astype(jnp.bfloat16)             # square in f32, feed MXU in bf16

    # Two bf16 MXU contractions with f32 accumulation; mean goes straight into the
    # resident f32 output block, variance into a VMEM scratch accumulator.
    o_ref[...] += jnp.dot(x, wm_ref[...], preferred_element_type=jnp.float32)
    var_acc[...] += jnp.dot(xsq, wv_ref[...], preferred_element_type=jnp.float32)

    @pl.when(k == pl.num_programs(2) - 1)
    def _():
        z_std = jnp.sqrt(var_acc[...] + bv_ref[...])
        o_ref[...] = o_ref[...] + bm_ref[...] + z_std * noise_ref[...]


# ----------------------------------------------------------------------------- wrappers
@partial(jax.jit, static_argnames=("n_out",))
def backbone_zmean(x, wm_p, bm_p, *, n_out):
    """Tiled z_mean = x @ W_mean + b_mean (wm_p/bm_p from prepare_linear_params)."""
    B, K = x.shape
    Kp, Np = wm_p.shape
    tb, tk, tn = _common_tiles(B, Kp, Np)

    xp = x.astype(jnp.bfloat16)
    if Kp != K:
        xp = jnp.pad(xp, ((0, 0), (0, Kp - K)))      # zero-pad reduction axis only

    out = pl.pallas_call(
        _zmean_kernel,
        out_shape=jax.ShapeDtypeStruct((B, Np), jnp.float32),
        grid_spec=pltpu.PrefetchScalarGridSpec(
            num_scalar_prefetch=0,
            grid=(_cdiv(B, tb), Np // tn, Kp // tk),
            in_specs=[
                pl.BlockSpec((tb, tk), lambda i, j, k: (i, k)),   # x      (bf16)
                pl.BlockSpec((tk, tn), lambda i, j, k: (k, j)),   # W_mean (bf16)
                pl.BlockSpec((1, tn), lambda i, j, k: (0, j)),    # b_mean (f32)
            ],
            out_specs=pl.BlockSpec((tb, tn), lambda i, j, k: (i, j)),
        ),
        compiler_params=pltpu.CompilerParams(
            dimension_semantics=_DIM_SEM,
            vmem_limit_bytes=_vmem_limit_bytes(tb, tk, tn, sample=False),
        ),
    )(xp, wm_p, bm_p)
    return out if n_out == Np else out[:, :n_out]


@partial(jax.jit, static_argnames=("n_out",))
def backbone_sample(x, wm_p, wv_p, bm_p, bv_p, noise, *, n_out):
    """Tiled reparameterized sample z = z_mean + z_std * noise."""
    B, K = x.shape
    Kp, Np = wm_p.shape
    tb, tk, tn = _common_tiles(B, Kp, Np)

    xp = x.astype(jnp.bfloat16)
    if Kp != K:
        xp = jnp.pad(xp, ((0, 0), (0, Kp - K)))      # zero-pad reduction axis only
    nz = noise.astype(jnp.float32)
    if n_out != Np:
        nz = jnp.pad(nz, ((0, 0), (0, Np - n_out)))  # lane-alignment fallback only

    out = pl.pallas_call(
        _sample_kernel,
        out_shape=jax.ShapeDtypeStruct((B, Np), jnp.float32),
        grid_spec=pltpu.PrefetchScalarGridSpec(
            num_scalar_prefetch=0,
            grid=(_cdiv(B, tb), Np // tn, Kp // tk),
            in_specs=[
                pl.BlockSpec((tb, tk), lambda i, j, k: (i, k)),   # x      (bf16)
                pl.BlockSpec((tk, tn), lambda i, j, k: (k, j)),   # W_mean (bf16)
                pl.BlockSpec((tk, tn), lambda i, j, k: (k, j)),   # W_var  (bf16)
                pl.BlockSpec((1, tn), lambda i, j, k: (0, j)),    # b_mean (f32)
                pl.BlockSpec((1, tn), lambda i, j, k: (0, j)),    # b_var  (f32)
                pl.BlockSpec((tb, tn), lambda i, j, k: (i, j)),   # noise  (f32)
            ],
            out_specs=pl.BlockSpec((tb, tn), lambda i, j, k: (i, j)),
            scratch_shapes=[pltpu.VMEM((tb, tn), jnp.float32)],   # variance accumulator
        ),
        compiler_params=pltpu.CompilerParams(
            dimension_semantics=_DIM_SEM,
            vmem_limit_bytes=_vmem_limit_bytes(tb, tk, tn, sample=True),
        ),
    )(xp, wm_p, wv_p, bm_p, bv_p, nz)
    return out if n_out == Np else out[:, :n_out]


# ----------------------------------------------------------------------------- module
class BackboneJAX:
    """JAX/Pallas port of the PyTorch Backbone module (deterministic init)."""

    def __init__(self, num_inputs, num_outputs, prio_mean, prio_rho,
                 num_gaussian_block, activation=None):
        self.num_inputs = num_inputs
        self.num_outputs = num_outputs
        self.activation = activation
        self.num_gaussian_block = num_gaussian_block
        self.prio_mean = prio_mean
        self.prio_rho = prio_rho
        self.log_pi = -0.5 * math.log(2.0 * math.pi)
        # Parameters initialized exactly as in the module's __init__.
        self.weight_mean = jnp.full((num_inputs, num_outputs), prio_mean, jnp.float32)
        self.weight_rho = jnp.full((num_inputs, num_outputs), prio_rho, jnp.float32)
        self.bias_mean = jnp.full((1, num_outputs), prio_mean, jnp.float32)
        self.bias_rho = jnp.full((1, num_outputs), prio_rho, jnp.float32)
        self.prio_var = math.log(1.0 + math.exp(prio_rho)) ** 2
        self.refresh_param_cache()

    def refresh_param_cache(self):
        """Recompute softplus^2 variances and the cached bf16/padded kernel params.

        Called once at init (and whenever parameters change): this hoists the stable
        softplus, the squaring, the bf16 cast and the 128-alignment padding out of the
        per-forward path so no constant-tensor HBM traffic happens per call.
        """
        sp_w = jax.nn.softplus(self.weight_rho)
        sp_b = jax.nn.softplus(self.bias_rho)
        self.weight_var = sp_w * sp_w
        self.bias_var = sp_b * sp_b
        self._wm_p, self._bm_p = prepare_linear_params(self.weight_mean, self.bias_mean)
        self._wv_p, self._bv_p = prepare_linear_params(self.weight_var, self.bias_var)

    def generate_noise(self, key, batch):
        # Mirrors the reference generate_noise: draw num_gaussian_block gaussians,
        # then choose with replacement to fill the (batch, num_outputs) noise matrix.
        kb, ki = jax.random.split(key)
        base = jax.random.normal(kb, (self.num_gaussian_block,), jnp.float32)
        idx = jax.random.randint(ki, (batch * self.num_outputs,), 0,
                                 self.num_gaussian_block)
        return base[idx].reshape(batch, self.num_outputs)

    def forward(self, x, mode, key=None):
        act = self.activation if self.activation is not None else (lambda v: v)

        if mode == 'map':
            z_mean = backbone_zmean(x, self._wm_p, self._bm_p, n_out=self.num_outputs)
            return act(z_mean)

        noise = self.generate_noise(key, x.shape[0])
        z = backbone_sample(x, self._wm_p, self._wv_p, self._bm_p, self._bv_p, noise,
                            n_out=self.num_outputs)
        if mode == 'mc':
            return act(z)

        # TODO(synk): the reference compute_kl_divergence evaluates
        # compute_log_probability with IDENTICAL (x, mean_prio, std_post) args for both
        # the posterior and prior terms, so their difference sums to exactly zero; we
        # return that zero directly instead of reproducing it with kernel work.
        kl = jnp.float32(0.0)
        return act(z), kl


# ----------------------------------------------------------------------------- demo
if __name__ == "__main__":
    # ---- Model-level check (Backbone forward: 'map' / 'mc' / 'kl' modes) ----
    B, NUM_IN, NUM_OUT = 16, 48, 128
    model = BackboneJAX(num_inputs=NUM_IN, num_outputs=NUM_OUT,
                        prio_mean=0.1, prio_rho=-3.0, num_gaussian_block=4,
                        activation=None)

    key = jax.random.PRNGKey(0)
    kx, kn = jax.random.split(key)
    x = jax.random.normal(kx, (B, NUM_IN), jnp.float32)

    out_map = model.forward(x, 'map', kn)
    out_mc = model.forward(x, 'mc', kn)
    out_kl, kl = model.forward(x, 'kl', kn)
    jax.block_until_ready((out_map, out_mc, out_kl, kl))

    assert out_map.shape == (B, NUM_OUT)
    assert out_mc.shape == (B, NUM_OUT)
    assert out_kl.shape == (B, NUM_OUT)
    assert kl.shape == ()

    # bf16-mirrored pure-JAX reference (the kernels feed the MXU bf16 inputs with
    # f32 accumulation, so mirror the same casts here).
    def bf(v):
        return v.astype(jnp.bfloat16).astype(jnp.float32)

    noise = model.generate_noise(kn, B)
    z_mean_ref = bf(x) @ bf(model.weight_mean) + model.bias_mean
    z_std_ref = jnp.sqrt(bf(jnp.square(bf(x))) @ bf(model.weight_var) + model.bias_var)
    z_ref = z_mean_ref + z_std_ref * noise

    assert jnp.allclose(out_map, z_mean_ref, atol=1e-2, rtol=1e-2)
    assert jnp.allclose(out_mc, z_ref, atol=1e-2, rtol=1e-2)
    assert jnp.allclose(out_kl, z_ref, atol=1e-2, rtol=1e-2)
    assert float(kl) == 0.0

    # ---- Kernel-level check exercising the K-reduction loop (2 k-steps) and a
    #      multi-block N axis, with independent random parameters. ----
    B2, K2, N2 = 16, 1200, 256
    keys = jax.random.split(jax.random.PRNGKey(1), 4)
    x2 = jax.random.normal(keys[0], (B2, K2), jnp.float32)
    w2 = jax.random.normal(keys[1], (K2, N2), jnp.float32) * 0.05
    wv2 = jnp.square(jax.nn.softplus(jax.random.normal(keys[2], (K2, N2), jnp.float32) - 3.0))
    b2 = jnp.full((1, N2), 0.25, jnp.float32)
    bv2 = jnp.full((1, N2), 0.01, jnp.float32)
    nz2 = jax.random.normal(keys[3], (B2, N2), jnp.float32)

    wm_p, bm_p = prepare_linear_params(w2, b2)
    wv_p, bv_p = prepare_linear_params(wv2, bv2)
    zm2 = backbone_zmean(x2, wm_p, bm_p, n_out=N2)
    z2 = backbone_sample(x2, wm_p, wv_p, bm_p, bv_p, nz2, n_out=N2)
    jax.block_until_ready((zm2, z2))

    zm2_ref = bf(x2) @ bf(w2) + b2
    z2_ref = zm2_ref + jnp.sqrt(bf(jnp.square(bf(x2))) @ bf(wv2) + bv2) * nz2
    assert jnp.allclose(zm2, zm2_ref, atol=1e-2, rtol=1e-2)
    assert jnp.allclose(z2, z2_ref, atol=1e-2, rtol=1e-2)

    print("KERNEL_OK")
</pallas_src>

<mosaic_0001>
module attributes {stable_mosaic.version = 11 : i64} {
  func.func @_zmean_kernel(%arg0: i32, %arg1: i32, %arg2: i32, %arg3: memref<8x128xbf16, #tpu.memory_space<vmem>>, %arg4: memref<128x128xbf16, #tpu.memory_space<vmem>>, %arg5: memref<1x128xf32, #tpu.memory_space<vmem>>, %arg6: memref<8x128xf32, #tpu.memory_space<vmem>>) attributes {dimension_semantics = [#tpu.dimension_semantics<parallel>, #tpu.dimension_semantics<parallel>, #tpu.dimension_semantics<arbitrary>], iteration_bounds = array<i64: 2, 1, 1>, scalar_prefetch = 0 : i64, scratch_operands = 0 : i64, tpu.core_type = #tpu.core_type<tc>, window_params = [{transform_indices = @transform_0, window_bounds = array<i64: 8, 128>}, {transform_indices = @transform_1, window_bounds = array<i64: 128, 128>}, {transform_indices = @transform_2, window_bounds = array<i64: 1, 128>}, {transform_indices = @transform_3, window_bounds = array<i64: 8, 128>}]} {
    %c0_i32 = arith.constant 0 : i32
    %0 = arith.cmpi eq, %arg2, %c0_i32 : i32
    %1 = arith.extui %0 : i1 to i32
    %c0_i32_0 = arith.constant 0 : i32
    %2 = arith.cmpi ne, %1, %c0_i32_0 : i32
    scf.if %2 {
      %cst_10 = arith.constant 0.000000e+00 : f32
      %12 = vector.broadcast %cst_10 : f32 to vector<8x128xf32>
      %c0_11 = arith.constant 0 : index
      %c0_12 = arith.constant 0 : index
      %13 = vector.load %arg6[%c0_11, %c0_12] : memref<8x128xf32, #tpu.memory_space<vmem>>, vector<8x128xf32>
      tpu.vector_store %arg6[%c0_11, %c0_12], %12 {strides = array<i32>} : memref<8x128xf32, #tpu.memory_space<vmem>>, vector<8x128xf32>,
    } else {
    }
    %c0 = arith.constant 0 : index
    %c0_1 = arith.constant 0 : index
    %3 = vector.load %arg6[%c0, %c0_1] : memref<8x128xf32, #tpu.memory_space<vmem>>, vector<8x128xf32>
    %c0_2 = arith.constant 0 : index
    %c0_3 = arith.constant 0 : index
    %4 = vector.load %arg3[%c0_2, %c0_3] : memref<8x128xbf16, #tpu.memory_space<vmem>>, vector<8x128xbf16>
    %c0_4 = arith.constant 0 : index
    %c0_5 = arith.constant 0 : index
    %5 = vector.load %arg4[%c0_4, %c0_5] : memref<128x128xbf16, #tpu.memory_space<vmem>>, vector<128x128xbf16>
    %cst = arith.constant dense<0.000000e+00> : vector<8x128xf32>
    %6 = tpu.matmul %4, %5, %cst {dimension_numbers = #tpu.dot_dimension_numbers<[1], [0], [0], [1], [0, 0, 1, 1], [], []>} : vector<8x128xbf16>, vector<128x128xbf16>, vector<8x128xf32> -> vector<8x128xf32>
    %7 = arith.addf %3, %6 : vector<8x128xf32>
    %c0_6 = arith.constant 0 : index
    %c0_7 = arith.constant 0 : index
    %8 = vector.load %arg6[%c0_6, %c0_7] : memref<8x128xf32, #tpu.memory_space<vmem>>, vector<8x128xf32>
    tpu.vector_store %arg6[%c0_6, %c0_7], %7 {strides = array<i32>} : memref<8x128xf32, #tpu.memory_space<vmem>>, vector<8x128xf32>,
    %c0_i32_8 = arith.constant 0 : i32
    %9 = arith.cmpi eq, %arg2, %c0_i32_8 : i32
    %10 = arith.extui %9 : i1 to i32
    %c0_i32_9 = arith.constant 0 : i32
    %11 = arith.cmpi ne, %10, %c0_i32_9 : i32
    scf.if %11 {
      %c0_10 = arith.constant 0 : index
      %c0_11 = arith.constant 0 : index
      %12 = vector.load %arg6[%c0_10, %c0_11] : memref<8x128xf32, #tpu.memory_space<vmem>>, vector<8x128xf32>
      %c0_12 = arith.constant 0 : index
      %c0_13 = arith.constant 0 : index
      %13 = vector.load %arg5[%c0_12, %c0_13] : memref<1x128xf32, #tpu.memory_space<vmem>>, vector<1x128xf32>
      %14 = vector.broadcast %13 : vector<1x128xf32> to vector<8x128xf32>
      %15 = arith.addf %12, %14 : vector<8x128xf32>
      %c0_14 = arith.constant 0 : index
      %c0_15 = arith.constant 0 : index
      %16 = vector.load %arg6[%c0_14, %c0_15] : memref<8x128xf32, #tpu.memory_space<vmem>>, vector<8x128xf32>
      tpu.vector_store %arg6[%c0_14, %c0_15], %15 {strides = array<i32>} : memref<8x128xf32, #tpu.memory_space<vmem>>, vector<8x128xf32>,
    } else {
    }
    return
  }
  func.func @transform_0(%arg0: i32, %arg1: i32, %arg2: i32) -> (i32, i32) {
    %c0_i32 = arith.constant 0 : i32
    return %arg0, %arg2 : i32, i32
  }
  func.func @transform_1(%arg0: i32, %arg1: i32, %arg2: i32) -> (i32, i32) {
    %c0_i32 = arith.constant 0 : i32
    return %arg2, %arg1 : i32, i32
  }
  func.func @transform_2(%arg0: i32, %arg1: i32, %arg2: i32) -> (i32, i32) {
    %c0_i32 = arith.constant 0 : i32
    %c0_i32_0 = arith.constant 0 : i32
    return %c0_i32, %arg1 : i32, i32
  }
  func.func @transform_3(%arg0: i32, %arg1: i32, %arg2: i32) -> (i32, i32) {
    %c0_i32 = arith.constant 0 : i32
    return %arg0, %arg1 : i32, i32
  }
}

</mosaic_0001>

<bundles_post_ra>
// kernel: backbone_zmean.1
= control target key start
LH: loop header
LB: loop body
LE: loop exit
PB: predicated region body
PF: predicated region fallthrough
CT: control target
= control target key end

     0   :  { %8 = vsyncpa [#allocation3], 0  ;;  %s904_s0 = inlined_call_operand.vmem [shape: bf16[16,128], index: 0, kind: input, shape index: {}]   ;;  %s905_s1 = inlined_call_operand.hbm [shape: bf16[128,128], index: 1, kind: input, shape index: {}]   ;;  %s906_s2 = inlined_call_operand.vmem [shape: f32[1,128], index: 2, kind: input, shape index: {}]   ;;  %s907_s3 = inlined_call_operand.hbm [shape: f32[16,128], index: 3, kind: output, shape index: {}]  }
   0x1   :  { %9 = vsyncpa [#allocation4], 0 }
   0x2   :  { %11 = vsyncpa [#allocation4 + $0x1], 0  ;;  %s751_s12 = smov 0   ;;  %s753_s13 = smov 0  }
   0x3   :  { %s755_s14 = smov 0   ;;  %s757_s15 = smov 0  }
   0x4   :  { %s759_s16 = smov 0   ;;  %s761_s17 = smov 0  }
   0x5 LB: > { %s483_s18 = sadd.s32 4294967295, %s723_s17   ;;  %s484_s19 = sadd.s32 4294967294, %s723_s17   ;;  %s723_s17 = sphi %s761_s17, %s17_s17   ;;  %s719_s16 = sphi %s759_s16, %s925_s16   ;;  %s715_s15 = sphi %s757_s15, %s924_s15   ;;  %s711_s14 = sphi %s755_s14, %s923_s14   ;;  %s707_s13 = sphi %s753_s13, %s922_s13   ;;  %s703_s12 = sphi %s751_s12, %s921_s12  }
   0x6   : > { %s36_s20 = sadd.s32 1, %s719_s16  ;;  %s127_s21 = sadd.s32 1, %s711_s14 }
   0x7   : > { %p38_p0 = scmp.ge.s32.totalorder %s36_s20, 2  ;;  %p137_p1 = scmp.ne.s32.totalorder %s711_s14, %s707_s13 }
   0x8   : > { %p138_p2 = scmp.eq.s32.totalorder %s483_s18, 1  ;;  %p143_p3 = scmp.ne.s32.totalorder %s707_s13, %s703_s12 }
   0x9   : > { %s927_s20 = smov (%p38_p0, %s36_s20), 0  ;;  %p144_p5 = scmp.eq.s32.totalorder %s484_s19, 1 }
   0xa   : > { %p791_p4 = por %p138_p2, %p137_p1  ;;  %s122_s23 = ssub.s32 %s719_s16, %s927_s20 }
   0xb   : > { %p485_p6 = scmp.ge.s32.totalorder %s723_s17, 1  ;;  %p125_p7 = scmp.eq.s32.totalorder %s122_s23, 0 }
   0xc   : > { %s912_s22 = scalar_select %p791_p4, 1, 0 }
   0xd   : > { %p798_p8 = por %p144_p5, %p143_p3  ;;  %p151_p9 = scmp.lt.s32.totalorder %s723_s17, 3 }
   0xe   : > { %s804_s25 = scalar_select %p125_p7, %s711_s14, %s127_s21  }
   0xf   : > { %s913_s24 = scalar_select %p798_p8, 1, 0 }
  0x10   : > { %p806_p10 = pnand %p485_p6, %p151_p9  ;;  %p810_p11 = scmp.eq.s32.totalorder %s483_s18, 0 }
  0x11   : > { %s725_s28 = smov [#allocation2]   ;;  %s613_s6 = scalar_lea.hbm %s905_s1, 1024 }
  0x12   : > { %s914_s26 = scalar_select %p806_p10, 1, 0 }
  0x13   : > { %s915_s27 = scalar_select %p810_p11, 1, 0 }
  0x14   : > { %p541_p12 = pneg %p806_p10  ;;  %s167_s29 = sshll.u32 %s725_s28, 4  ;;  %s168_s29 = int_to_ptr.vmem [resolvable:$true] %s167_s29 }
  0x15   : > { %p614_p0 = scmp.ne.s32.totalorder %s905_s1, %s613_s6  ;;  %p620_p5 = scmp.lt.u32.totalorder %s613_s6, %s905_s1 }
  0x16   : > { %p818_p13 = pnand %p810_p11, %p541_p12 }
  0x18   : > { %p615_p1 = pneg %p818_p13 }
  0x1a   : > { %p616_p2 = pnand %p615_p1, %p614_p0 }
  0x1c   : > { %p617_p3 = pneg %p616_p2 }
  0x1e   : > { %p622_p6 = pnand %p620_p5, %p617_p3 }
  0x20   : > { %625 = shalt.err (!%p622_p6)
}
  0x21   : > { %s626_s11 = scalar_lea.vmem %s168_s29, 1024  ;;  %p634_p8 = scmp.lt.s32.totalorder %s168_s29, %s168_s29 }
  0x22   : > { %p627_p7 = scmp.ne.s32.totalorder %s168_s29, %s626_s11  ;;  %p635_p4 = scmp.lt.s32.totalorder %s626_s11, %s626_s11 }
  0x24   : > { %p629_p9 = pnand %p627_p7, %p615_p1  ;;  %p636_p11 = por %p635_p4, %p634_p8 }
  0x26   : > { %p630_p12 = pneg %p629_p9 }
  0x28   : > { %p637_p10 = pnand %p636_p11, %p630_p12 }
  0x2a   : > { %640 = shalt.err (!%p637_p10)
}
  0x2b   : > { %s726_s18 = smov 64   ;;  %s727_s19 = smov 4  }
  0x2c   : > { %544 = dma.hbm_to_vmem [thread:$0]  (!%p818_p13), %s905_s1, 1024, %s168_s29, [#allocation3], %s726_s18, %s726_s18, %s727_s19  }
  0x2d   : > { %p917_p0 = scmp.ne.s32.totalorder %s914_s26, 0 }
  0x2e   : > { %p918_p2 = scmp.ne.s32.totalorder (!%p917_p0), %s915_s27, 0 }
  0x2f   : > { %199 = sbr.rel (%p917_p0) target bundleno = 316 (0x13c), region = 32 }
  0x36   : > { %694 = dma.done.wait (%p918_p2), [#allocation3], 1024  }
  0x37   : > { %696 = vsyncadd (%p918_p2), [#allocation3], 4294966272  ;;  %v728_v0 = vmov 0.0   ;;  %vm729_vm0 = vmmov 0   ;;  %v605_v1 = vld [vmem:[#allocation2] sm:$0xff]   ;;  %v606_v2 = vld [vmem:[#allocation2 + $0x8] sm:$0xff]  }
  0x38   : > { %515 = vmatprep.subr.bf16.mxu0 %v728_v0  ;;  %531 = vmatprep.mubr.msk.bf16.mxu0 %vm729_vm0, %v728_v0  ;;  %v607_v3 = vld [vmem:[#allocation2 + $0x10] sm:$0xff]   ;;  %v608_v4 = vld [vmem:[#allocation2 + $0x18] sm:$0xff]   ;;  %v609_v5 = vld [vmem:[#allocation2 + $0x20] sm:$0xff]   ;;  %p228_p4 = scmp.lt.s32.totalorder %s715_s15, 1  ;;  %s225_s4 = sand.u32 1, %s707_s13  }
  0x39   : > { %516 = vmatpush3.bf16.msra.mxu0 %v605_v1  ;;  %v610_v6 = vld [vmem:[#allocation2 + $0x28] sm:$0xff]   ;;  %v611_v7 = vld [vmem:[#allocation2 + $0x30] sm:$0xff]   ;;  %v612_v8 = vld [vmem:[#allocation2 + $0x38] sm:$0xff]   ;;  %s491_s5 = sshll.u32 %s225_s4, 3  ;;  %s503_s8 = sshll.u32 %s715_s15, 7 }
  0x3a   : > { %517 = vmatprep.subr.bf16.mxu0 %v728_v0  ;;  %s229_s26 = scalar_select %p228_p4, %s715_s15, 1  ;;  %v501_v11 = vld [vmem:[%s906_s2] ss:$0 sm:$0xff] }
  0x3b   : > { %s227_s9 = scalar_lea.vmem [#allocation5], %s491_s5  ;;  %s857_s19 = scalar_lea.hbm %s907_s3, %s503_s8 }
  0x3c   : > { %s492_s27 = sshll.u32 %s229_s26, 2  ;;  %s381_s10 = sshll.u32 %s227_s9, 4  ;;  %s859_s10 = int_to_ptr.vmem [resolvable:$true] %s381_s10 }
  0x3d   : > { %518 = vmatpush3.bf16.msra.mxu0 %v606_v2  ;;  %s234_s30 = scalar_lea.vmem %s904_s0, %s492_s27  ;;  %s367_s21 = scalar_lea.sflag [#allocation4], %s225_s4 }
  0x3e   : > { %519 = vmatprep.subr.bf16.mxu0 %v728_v0  ;;  %v246_v9 = vld [vmem:[%s234_s30] sm:$0xf]  ;;  %s641_s23 = scalar_lea.vmem %s859_s10, 128  ;;  %p919_p10 = scmp.ne.s32.totalorder %s912_s22, 0 }
  0x3f   : > { %p642_p8 = scmp.ne.s32.totalorder %s859_s10, %s641_s23  ;;  %s730_s15 = smov [#allocation5]  }
  0x40   : > { %s645_s26 = sshll.u32 %s730_s15, 4  ;;  %s646_s26 = int_to_ptr.vmem [resolvable:$false] %s645_s26 }
  0x41   : > { %520 = vmatpush3.bf16.msra.mxu0 %v607_v3  ;;  %p643_p11 = pnand %p642_p8, %p919_p10  ;;  %s647_s27 = scalar_lea.vmem %s646_s26, 256 }
  0x42   : > { %521 = vmatprep.subr.bf16.mxu0 %v728_v0  ;;  %p648_p1 = scmp.lt.s32.totalorder %s859_s10, %s646_s26  ;;  %p649_p3 = scmp.lt.s32.totalorder %s647_s27, %s641_s23 }
  0x43   : > { %p644_p13 = pneg %p643_p11 }
  0x44   : > { %p650_p5 = por %p649_p3, %p648_p1 }
  0x45   : > { %522 = vmatpush3.bf16.msra.mxu0 %v608_v4 }
  0x46   : > { %523 = vmatprep.subr.bf16.mxu0 %v728_v0  ;;  %p651_p6 = pnand %p650_p5, %p644_p13 }
  0x49   : > { %524 = vmatpush3.bf16.msra.mxu0 %v609_v5 }
  0x4a   : > { %525 = vmatprep.subr.bf16.mxu0 %v728_v0 }
  0x4d   : > { %526 = vmatpush3.bf16.msra.mxu0 %v610_v6 }
  0x4e   : > { %527 = vmatprep.subr.bf16.mxu0 %v728_v0 }
  0x51   : > { %528 = vmatpush3.bf16.msra.mxu0 %v611_v7 }
  0x52   : > { %529 = vmatprep.subr.bf16.mxu0 %v728_v0 }
  0x55   : > { %530 = vmatpush3.bf16.msra.mxu0 %v612_v8 }
  0x58   : > { %532 = vmatmul.mubr.bf16.vlgmr.msra.gmra.mrb[0].mxu0 %v246_v9 }
 0x12b   : > { %v345_v10 = vpop.f32.mrb[0].mxu0 }
 0x12c   : > { %v533_v12 = vpop.f32.mrb[1].mxu0  ;;  %v364_v15 = vadd.f32 %v501_v11, %v345_v10 }
 0x12d   : > { %v348_v13 = vpop.f32.mrb[2].mxu0 }
 0x12e   : > { %v534_v14 = vpop.f32.mrb[3].mxu0  ;;  %365 = vst [vmem:[%s227_s9] sm:$0xff] %v364_v15 }
 0x12f   : > { %654 = shalt.err (!%p651_p6)
}
 0x130   : > { %s655_s28 = scalar_lea.hbm %s857_s19, 128  ;;  %s659_s4 = scalar_lea.hbm %s907_s3, 256 }
 0x131   : > { %p656_p7 = scmp.ne.s32.totalorder %s857_s19, %s655_s28  ;;  %p660_p0 = scmp.lt.u32.totalorder %s857_s19, %s907_s3 }
 0x132   : > { %p661_p2 = scmp.lt.u32.totalorder %s659_s4, %s655_s28  ;;  %p663_p8 = scmp.lt.u32.totalorder %s655_s28, %s857_s19 }
 0x133   : > { %p657_p9 = pnand %p656_p7, %p919_p10 }
 0x134   : > { %p662_p4 = por %p661_p2, %p660_p0 }
 0x135   : > { %p658_p12 = pneg %p657_p9 }
 0x136   : > { %p664_p11 = por %p663_p8, %p662_p4 }
 0x138   : > { %p665_p13 = pnand %p664_p11, %p658_p12 }
 0x13a   : > { %668 = shalt.err (!%p665_p13)
}
 0x13b   : > { %539 = dma.vmem_to_hbm [thread:$0]  (%p919_p10), %s859_s10, 128, %s857_s19, %s367_s21  }
 0x13c PF: > { %p551_p1 = scmp.ge.s32.totalorder %s723_s17, 2  ;;  %s393_s7 = sand.u32 1, %s703_s12  }
 0x13d   : > { %p920_p3 = scmp.ne.s32.totalorder %s913_s24, 0  ;;  %s394_s8 = scalar_lea.sflag [#allocation4], %s393_s7 }
 0x13f   : > { %p546_p5 = pnand %p551_p1, %p920_p3 }
 0x141   : > { %698 = dma.done.wait (!%p546_p5), %s394_s8, 128  }
 0x142   : > { %700 = vsyncadd (!%p546_p5), %s394_s8, 4294967168  ;;  %s17_s17 = sadd.s32 1, %s723_s17   ;;  %s921_s12 = smov %s707_s13 }
 0x143   : > { %p14_p6 = scmp.ge.s32.totalorder %s17_s17, 4   ;;  %s922_s13 = smov %s711_s14 }
 0x144   : > { %s923_s14 = smov %s804_s25  ;;  %s924_s15 = smov %s719_s16 }
 0x145   : > { %s925_s16 = smov %s927_s20  ;;  %16 = sbr.rel (!%p14_p6) target bundleno = 5 (0x5), region = 84 }
 0x14c   :  { %399 = vsyncpa [#allocation3], 1 }
 0x14d   :  { %401 = vsyncpa [#allocation3 + $0x1], 1 }
 0x14e   :  { %402 = vsyncpa [#allocation4], 1 }
 0x14f   :  { %404 = vsyncpa [#allocation4 + $0x1], 1 }

</bundles_post_ra>
